<compile_context>
chip_gen: v5e
topology: v5e:2x2
jax: 0.10.0
libtpu: 0.0.40
codegen_flags: <defaults>
</compile_context>

<pallas_src>
import functools

import jax
import jax.numpy as jnp
from jax.experimental import pallas as pl
from jax.experimental.pallas import tpu as pltpu

F_IN = 9
OUT_DIM = 2
LANE = 128
N_LAYERS = 4
LAYER_DIMS = [(9, 128), (128, 64), (64, 32), (32, 2)]


def mlp_kernel(x_ref, w_ref, b_ref, o_ref):
    # In-kernel f32 -> bf16 cast of the x tile (no separate un-hidden XLA pass
    # over x in the wrapper).
    xb = x_ref[...].astype(jnp.bfloat16)                            # (tile, 9)
    # Layer 1: (tile, 9) @ (9, 128) -> f32 accumulation on the MXU.
    w1 = w_ref[0][:F_IN, :]                                         # (9, 128) bf16
    h = jnp.dot(xb, w1, preferred_element_type=jnp.float32)
    h = jnp.maximum(h + b_ref[0:1, :], 0.0)
    # Layers 2-4 run on full 128-lane zero-padded activations; the padded weight
    # rows/cols and padded biases are zero, so padded lanes stay exactly zero
    # and contribute nothing to the valid lanes.
    h = jnp.dot(h.astype(jnp.bfloat16), w_ref[1], preferred_element_type=jnp.float32)
    h = jnp.maximum(h + b_ref[1:2, :], 0.0)
    h = jnp.dot(h.astype(jnp.bfloat16), w_ref[2], preferred_element_type=jnp.float32)
    h = jnp.maximum(h + b_ref[2:3, :], 0.0)
    h = jnp.dot(h.astype(jnp.bfloat16), w_ref[3], preferred_element_type=jnp.float32)
    # Narrow (tile, OUT_DIM) store: only the 2 real output lanes go to HBM.
    o_ref[...] = (h[:, :OUT_DIM] + b_ref[3:4, :OUT_DIM]).astype(o_ref.dtype)


def pack_params(params):
    """Pack the 4x(W, b) into one (4,128,128) bf16 blob + one (8,128) f32 blob."""
    ws, bs = [], []
    for l in range(N_LAYERS):
        w, b = params[2 * l], params[2 * l + 1]
        fi, fo = w.shape
        ws.append(jnp.pad(w, ((0, LANE - fi), (0, LANE - fo))))
        bs.append(jnp.pad(b.reshape(1, -1), ((0, 0), (0, LANE - fo))))
    w_packed = jnp.stack(ws).astype(jnp.bfloat16)                      # (4, 128, 128)
    b_packed = jnp.concatenate(
        bs + [jnp.zeros((8 - N_LAYERS, LANE), jnp.float32)], axis=0)   # (8, 128)
    return w_packed, b_packed.astype(jnp.float32)


def _round_up(n, m):
    return ((n + m - 1) // m) * m


@functools.partial(jax.jit, static_argnames=("tile_b",))
def ann_forward(x, w_packed, b_packed, tile_b=4096):
    B = x.shape[0]
    # Batch tile: as large as tile_b allows (amortizes the ~0.35us/step pipeline
    # overhead), multiple of 16 sublanes (native bf16 (16,128) tile), with a
    # 16-row floor for tiny batches.  No B/2 cap: v5e/v6e are single-TC and on
    # v7x large batches already yield plenty of grid steps at tile_b=4096.
    tile = max(16, min(_round_up(tile_b, 16), _round_up(B, 16)))
    grid = (pl.cdiv(B, tile),)

    out = pl.pallas_call(
        mlp_kernel,
        out_shape=jax.ShapeDtypeStruct((B, OUT_DIM), jnp.float32),
        grid_spec=pltpu.PrefetchScalarGridSpec(
            num_scalar_prefetch=0,
            grid=grid,
            in_specs=[
                pl.BlockSpec((tile, F_IN), lambda i: (i, 0)),               # x tile (f32)
                pl.BlockSpec((N_LAYERS, LANE, LANE), lambda i: (0, 0, 0)),  # weights (resident)
                pl.BlockSpec((8, LANE), lambda i: (0, 0)),                  # biases (resident)
            ],
            out_specs=pl.BlockSpec((tile, OUT_DIM), lambda i: (i, 0)),      # narrow (tile, 2) out
        ),
        compiler_params=pltpu.CompilerParams(
            dimension_semantics=("parallel",),
            vmem_limit_bytes=32 * 1024 * 1024,
        ),
    )(x, w_packed, b_packed)
    return out


def init_params(key):
    """nn.Linear-style init: U(-1/sqrt(fan_in), +1/sqrt(fan_in)); W stored (in, out)."""
    params = []
    for fan_in, fan_out in LAYER_DIMS:
        key, kw, kb = jax.random.split(key, 3)
        bound = 1.0 / jnp.sqrt(float(fan_in))
        w = jax.random.uniform(kw, (fan_in, fan_out), jnp.float32, -bound, bound)
        b = jax.random.uniform(kb, (fan_out,), jnp.float32, -bound, bound)
        params.extend([w, b])
    return tuple(params)


def reference_forward_f32(x, params):
    w1, b1, w2, b2, w3, b3, w4, b4 = params
    h = jax.nn.relu(x @ w1 + b1)
    h = jax.nn.relu(h @ w2 + b2)
    h = jax.nn.relu(h @ w3 + b3)
    return h @ w4 + b4


def reference_forward_bf16(x, params):
    # Matches the kernel's numerics: bf16 matmul operands, f32 accumulation/bias/ReLU.
    w1, b1, w2, b2, w3, b3, w4, b4 = params
    bf = jnp.bfloat16
    h = jnp.dot(x.astype(bf), w1.astype(bf), preferred_element_type=jnp.float32)
    h = jax.nn.relu(h + b1)
    h = jnp.dot(h.astype(bf), w2.astype(bf), preferred_element_type=jnp.float32)
    h = jax.nn.relu(h + b2)
    h = jnp.dot(h.astype(bf), w3.astype(bf), preferred_element_type=jnp.float32)
    h = jax.nn.relu(h + b3)
    return jnp.dot(h.astype(bf), w4.astype(bf), preferred_element_type=jnp.float32) + b4


if __name__ == "__main__":
    key = jax.random.PRNGKey(0)
    k_param, k_x = jax.random.split(key)

    params = init_params(k_param)
    w_packed, b_packed = pack_params(params)

    batch = 19  # deliberately NOT a multiple of the tile: exercises the partial-block path
    x = jax.random.uniform(k_x, (batch, F_IN), jnp.float32, -1.0, 1.0)

    out = ann_forward(x, w_packed, b_packed, tile_b=4096)
    out = jax.block_until_ready(out)
    assert out.shape == (batch, OUT_DIM)

    ref_bf16 = reference_forward_bf16(x, params)
    ref_f32 = reference_forward_f32(x, params)
    assert jnp.allclose(out, ref_bf16, atol=1e-3, rtol=1e-3), "mismatch vs matched-precision ref"
    assert jnp.allclose(out, ref_f32, atol=5e-2, rtol=5e-2), "mismatch vs f32 reference"

    print("KERNEL_OK")
</pallas_src>

<mosaic_0001>
module attributes {stable_mosaic.version = 11 : i64} {
  func.func @mlp_kernel(%arg0: i32, %arg1: memref<32x9xf32, #tpu.memory_space<vmem>>, %arg2: memref<4x128x128xbf16, #tpu.memory_space<vmem>>, %arg3: memref<8x128xf32, #tpu.memory_space<vmem>>, %arg4: memref<32x2xf32, #tpu.memory_space<vmem>>) attributes {dimension_semantics = [#tpu.dimension_semantics<parallel>], iteration_bounds = array<i64: 1>, scalar_prefetch = 0 : i64, scratch_operands = 0 : i64, tpu.core_type = #tpu.core_type<tc>, window_params = [{transform_indices = @transform_0, window_bounds = array<i64: 32, 9>}, {pipeline_mode = #tpu.pipeline_mode<synchronous>, transform_indices = @transform_1, window_bounds = array<i64: 4, 128, 128>}, {pipeline_mode = #tpu.pipeline_mode<synchronous>, transform_indices = @transform_2, window_bounds = array<i64: 8, 128>}, {transform_indices = @transform_3, window_bounds = array<i64: 32, 2>}]} {
    %c0 = arith.constant 0 : index
    %c0_0 = arith.constant 0 : index
    %0 = vector.load %arg1[%c0, %c0_0] : memref<32x9xf32, #tpu.memory_space<vmem>>, vector<32x9xf32>
    %1 = arith.truncf %0 : vector<32x9xf32> to vector<32x9xbf16>
    %c0_1 = arith.constant 0 : index
    %c0_2 = arith.constant 0 : index
    %c0_3 = arith.constant 0 : index
    %2 = vector.load %arg2[%c0_1, %c0_2, %c0_3] : memref<4x128x128xbf16, #tpu.memory_space<vmem>>, vector<1x128x128xbf16>
    %3 = vector.shape_cast %2 : vector<1x128x128xbf16> to vector<128x128xbf16>
    %4 = vector.extract_strided_slice %3 {offsets = [0, 0], sizes = [9, 128], strides = [1, 1]} : vector<128x128xbf16> to vector<9x128xbf16>
    %cst = arith.constant dense<0.000000e+00> : vector<32x128xf32>
    %5 = tpu.matmul %1, %4, %cst {dimension_numbers = #tpu.dot_dimension_numbers<[1], [0], [0], [1], [0, 0, 1, 1], [], []>} : vector<32x9xbf16>, vector<9x128xbf16>, vector<32x128xf32> -> vector<32x128xf32>
    %c0_4 = arith.constant 0 : index
    %c0_5 = arith.constant 0 : index
    %6 = vector.load %arg3[%c0_4, %c0_5] : memref<8x128xf32, #tpu.memory_space<vmem>>, vector<1x128xf32>
    %7 = vector.broadcast %6 : vector<1x128xf32> to vector<32x128xf32>
    %8 = arith.addf %5, %7 : vector<32x128xf32>
    %cst_6 = arith.constant 0.000000e+00 : f32
    %9 = vector.broadcast %cst_6 : f32 to vector<32x128xf32>
    %10 = arith.maximumf %8, %9 : vector<32x128xf32>
    %11 = arith.truncf %10 : vector<32x128xf32> to vector<32x128xbf16>
    %c1 = arith.constant 1 : index
    %c0_7 = arith.constant 0 : index
    %c0_8 = arith.constant 0 : index
    %12 = vector.load %arg2[%c1, %c0_7, %c0_8] : memref<4x128x128xbf16, #tpu.memory_space<vmem>>, vector<1x128x128xbf16>
    %13 = vector.shape_cast %12 : vector<1x128x128xbf16> to vector<128x128xbf16>
    %cst_9 = arith.constant dense<0.000000e+00> : vector<32x128xf32>
    %14 = tpu.matmul %11, %13, %cst_9 {dimension_numbers = #tpu.dot_dimension_numbers<[1], [0], [0], [1], [0, 0, 1, 1], [], []>} : vector<32x128xbf16>, vector<128x128xbf16>, vector<32x128xf32> -> vector<32x128xf32>
    %c1_10 = arith.constant 1 : index
    %c0_11 = arith.constant 0 : index
    %15 = vector.load %arg3[%c1_10, %c0_11] : memref<8x128xf32, #tpu.memory_space<vmem>>, vector<1x128xf32>
    %16 = vector.broadcast %15 : vector<1x128xf32> to vector<32x128xf32>
    %17 = arith.addf %14, %16 : vector<32x128xf32>
    %cst_12 = arith.constant 0.000000e+00 : f32
    %18 = vector.broadcast %cst_12 : f32 to vector<32x128xf32>
    %19 = arith.maximumf %17, %18 : vector<32x128xf32>
    %20 = arith.truncf %19 : vector<32x128xf32> to vector<32x128xbf16>
    %c2 = arith.constant 2 : index
    %c0_13 = arith.constant 0 : index
    %c0_14 = arith.constant 0 : index
    %21 = vector.load %arg2[%c2, %c0_13, %c0_14] : memref<4x128x128xbf16, #tpu.memory_space<vmem>>, vector<1x128x128xbf16>
    %22 = vector.shape_cast %21 : vector<1x128x128xbf16> to vector<128x128xbf16>
    %cst_15 = arith.constant dense<0.000000e+00> : vector<32x128xf32>
    %23 = tpu.matmul %20, %22, %cst_15 {dimension_numbers = #tpu.dot_dimension_numbers<[1], [0], [0], [1], [0, 0, 1, 1], [], []>} : vector<32x128xbf16>, vector<128x128xbf16>, vector<32x128xf32> -> vector<32x128xf32>
    %c2_16 = arith.constant 2 : index
    %c0_17 = arith.constant 0 : index
    %24 = vector.load %arg3[%c2_16, %c0_17] : memref<8x128xf32, #tpu.memory_space<vmem>>, vector<1x128xf32>
    %25 = vector.broadcast %24 : vector<1x128xf32> to vector<32x128xf32>
    %26 = arith.addf %23, %25 : vector<32x128xf32>
    %cst_18 = arith.constant 0.000000e+00 : f32
    %27 = vector.broadcast %cst_18 : f32 to vector<32x128xf32>
    %28 = arith.maximumf %26, %27 : vector<32x128xf32>
    %29 = arith.truncf %28 : vector<32x128xf32> to vector<32x128xbf16>
    %c3 = arith.constant 3 : index
    %c0_19 = arith.constant 0 : index
    %c0_20 = arith.constant 0 : index
    %30 = vector.load %arg2[%c3, %c0_19, %c0_20] : memref<4x128x128xbf16, #tpu.memory_space<vmem>>, vector<1x128x128xbf16>
    %31 = vector.shape_cast %30 : vector<1x128x128xbf16> to vector<128x128xbf16>
    %cst_21 = arith.constant dense<0.000000e+00> : vector<32x128xf32>
    %32 = tpu.matmul %29, %31, %cst_21 {dimension_numbers = #tpu.dot_dimension_numbers<[1], [0], [0], [1], [0, 0, 1, 1], [], []>} : vector<32x128xbf16>, vector<128x128xbf16>, vector<32x128xf32> -> vector<32x128xf32>
    %33 = vector.extract_strided_slice %32 {offsets = [0, 0], sizes = [32, 2], strides = [1, 1]} : vector<32x128xf32> to vector<32x2xf32>
    %c3_22 = arith.constant 3 : index
    %c0_23 = arith.constant 0 : index
    %34 = vector.load %arg3[%c3_22, %c0_23] : memref<8x128xf32, #tpu.memory_space<vmem>>, vector<1x2xf32>
    %35 = vector.broadcast %34 : vector<1x2xf32> to vector<32x2xf32>
    %36 = arith.addf %33, %35 : vector<32x2xf32>
    %c0_24 = arith.constant 0 : index
    %c0_25 = arith.constant 0 : index
    %37 = vector.load %arg4[%c0_24, %c0_25] : memref<32x2xf32, #tpu.memory_space<vmem>>, vector<32x2xf32>
    tpu.vector_store %arg4[%c0_24, %c0_25], %36 {strides = array<i32>} : memref<32x2xf32, #tpu.memory_space<vmem>>, vector<32x2xf32>,
    return
  }
  func.func @transform_0(%arg0: i32) -> (i32, i32) {
    %c0_i32 = arith.constant 0 : i32
    %c0_i32_0 = arith.constant 0 : i32
    return %arg0, %c0_i32 : i32, i32
  }
  func.func @transform_1(%arg0: i32) -> (i32, i32, i32) {
    %c0_i32 = arith.constant 0 : i32
    %c0_i32_0 = arith.constant 0 : i32
    %c0_i32_1 = arith.constant 0 : i32
    %c0_i32_2 = arith.constant 0 : i32
    return %c0_i32, %c0_i32_0, %c0_i32_1 : i32, i32, i32
  }
  func.func @transform_2(%arg0: i32) -> (i32, i32) {
    %c0_i32 = arith.constant 0 : i32
    %c0_i32_0 = arith.constant 0 : i32
    %c0_i32_1 = arith.constant 0 : i32
    return %c0_i32, %c0_i32_0 : i32, i32
  }
  func.func @transform_3(%arg0: i32) -> (i32, i32) {
    %c0_i32 = arith.constant 0 : i32
    %c0_i32_0 = arith.constant 0 : i32
    return %arg0, %c0_i32 : i32, i32
  }
}

</mosaic_0001>

<bundles_post_ra>
// kernel: ann_forward.1
= control target key start
LH: loop header
LB: loop body
LE: loop exit
PB: predicated region body
PF: predicated region fallthrough
CT: control target
= control target key end

     0   :  { %8 = vsyncpa [#allocation3], 0  ;;  %s583_s15 = smov [#allocation2]   ;;  %s584_s17 = smov 64   ;;  %s645_s0 = inlined_call_operand.vmem [shape: f32[19,9], index: 0, kind: input, shape index: {}]   ;;  %s646_s1 = inlined_call_operand.hbm [shape: bf16[4,128,128], index: 1, kind: input, shape index: {}]   ;;  %s647_s2 = inlined_call_operand.vmem [shape: f32[8,128], index: 2, kind: input, shape index: {}]   ;;  %s648_s3 = inlined_call_operand.vmem [shape: f32[19,2], index: 3, kind: output, shape index: {}]  }
   0x1   :  { %s15_s14 = sshll.u32 %s646_s1, 4  ;;  %s17_s16 = sshll.u32 %s583_s15, 4  ;;  %s16_s14 = int_to_ptr.hbm [resolvable:$true] %s15_s14  ;;  %s18_s16 = int_to_ptr.vmem [resolvable:$true] %s17_s16 }
   0x2   :  { %s585_s18 = smov 4  }
   0x3   :  { %23 = dma.hbm_to_vmem [thread:$0]  %s16_s14, 4096, %s18_s16, [#allocation3], %s584_s17, %s584_s17, %s585_s18  }
   0x4   :  { %581 = dma.done.wait [#allocation3], 4096  }
   0x5   :  { %582 = vsyncadd [#allocation3], 4294963200  ;;  %vm53_vm0 = vcmask 1043456   ;;  %vm54_vm1 = vcmask 1044480   ;;  %v586_v0 = vmov 65535   ;;  %v516_v3 = vld [vmem:[#allocation2] sm:$0xff] }
   0x6   :  { %v55_v1 = vsel %vm53_vm0, 4294967295, %v586_v0  ;;  %v31_v4 = vld [vmem:[%s645_s0] sm:$0xff]  ;;  %v32_v5 = vld [vmem:[%s645_s0 + $0x8] sm:$0xff]  ;;  %v524_v6 = vld [vmem:[#allocation2 + $0x78] sm:$0xff]  ;;  %vm46_vm2 = vcmask 72704   ;;  %vm359_vm3 = vcmask 15360  }
   0x7   :  { %v56_v2 = vsel %vm54_vm1, %v55_v1, 0  ;;  %v35_v8 = vpack.c.bf16 %v32_v5, %v31_v4  ;;  %541 = vmatpush.bf16.msra.mxu1 %v524_v6  ;;  %v523_v9 = vld [vmem:[#allocation2 + $0x70] sm:$0xff]  ;;  %v522_v10 = vld [vmem:[#allocation2 + $0x68] sm:$0xff]  ;;  %v521_v11 = vld [vmem:[#allocation2 + $0x60] sm:$0xff] }
   0x8   :  { %v58_v7 = vand.u32 %v516_v3, %v56_v2  ;;  %v33_v12 = vld [vmem:[%s645_s0 + $0x10] sm:$0xff]  ;;  %v34_v13 = vld [vmem:[%s645_s0 + $0x18] sm:$0xff]  ;;  %v518_v17 = vld [vmem:[#allocation2 + $0x48] sm:$0xff] }
   0x9   :  { %v520_v14 = vld [vmem:[#allocation2 + $0x58] sm:$0xff]  ;;  %v36_v15 = vpack.c.bf16 %v34_v13, %v33_v12  ;;  %v519_v16 = vld [vmem:[#allocation2 + $0x50] sm:$0xff]  ;;  %v517_v18 = vld [vmem:[#allocation2 + $0x40] sm:$0xff] }
   0xa   :  { %67 = vmatpush.bf16.msra.mxu0 %v58_v7  ;;  %v532_v19 = vld [vmem:[#allocation2 + $0xb8] sm:$0xff]  ;;  %v531_v21 = vld [vmem:[#allocation2 + $0xb0] sm:$0xff]  ;;  %v553_v22 = vld [vmem:[%s647_s2] ss:$0 sm:$0xff] }
   0xb   :  { %542 = vmatpush.bf16.msra.mxu1 %v523_v9  ;;  %244 = vmatpush.bf16.msra.mxu2 %v532_v19  ;;  %v530_v23 = vld [vmem:[#allocation2 + $0xa8] sm:$0xff]  ;;  %v529_v27 = vld [vmem:[#allocation2 + $0xa0] sm:$0xff]  ;;  %v528_v38 = vld [vmem:[#allocation2 + $0x98] sm:$0xff] }
   0xc   :  { %v527_v39 = vld [vmem:[#allocation2 + $0x90] sm:$0xff]  ;;  %v526_v40 = vld [vmem:[#allocation2 + $0x88] sm:$0xff]  ;;  %v525_v41 = vld [vmem:[#allocation2 + $0x80] sm:$0xff] }
   0xd   :  { %418 = vmatmul.msk.bf16.vlgmr.msra.gmra.mxu0 %vm46_vm2, %v35_v8  ;;  %v540_v42 = vld [vmem:[#allocation2 + $0xf8] sm:$0xff]  ;;  %v539_v44 = vld [vmem:[#allocation2 + $0xf0] sm:$0xff]  ;;  %v554_v45 = vld [vmem:[%s647_s2 + $0x1] ss:$0 sm:$0xff] }
   0xe   :  { %152 = vmatpush.bf16.msrb.mxu0 %v524_v6  ;;  %334 = vmatpush.bf16.msra.mxu3 %v540_v42  ;;  %v538_v46 = vld [vmem:[#allocation2 + $0xe8] sm:$0xff]  ;;  %v537_v50 = vld [vmem:[#allocation2 + $0xe0] sm:$0xff]  ;;  %v536_v61 = vld [vmem:[#allocation2 + $0xd8] sm:$0xff] }
   0xf   :  { %543 = vmatpush.bf16.msra.mxu1 %v522_v10  ;;  %245 = vmatpush.bf16.msra.mxu2 %v531_v21  ;;  %v535_v62 = vld [vmem:[#allocation2 + $0xd0] sm:$0xff]  ;;  %v534_v63 = vld [vmem:[#allocation2 + $0xc8] sm:$0xff]  ;;  %v533_v0 = vld [vmem:[#allocation2 + $0xc0] sm:$0xff] }
  0x10   :  { %v555_v2 = vld [vmem:[%s647_s2 + $0x2] ss:$0 sm:$0xff] }
  0x12   :  { %153 = vmatpush.bf16.msrb.mxu0 %v523_v9  ;;  %335 = vmatpush.bf16.msra.mxu3 %v539_v44 }
  0x13   :  { %544 = vmatpush.bf16.msra.mxu1 %v521_v11  ;;  %246 = vmatpush.bf16.msra.mxu2 %v530_v23 }
  0x16   :  { %154 = vmatpush.bf16.msrb.mxu0 %v522_v10  ;;  %336 = vmatpush.bf16.msra.mxu3 %v538_v46 }
  0x17   :  { %545 = vmatpush.bf16.msra.mxu1 %v520_v14  ;;  %247 = vmatpush.bf16.msra.mxu2 %v529_v27 }
  0x1a   :  { %155 = vmatpush.bf16.msrb.mxu0 %v521_v11  ;;  %337 = vmatpush.bf16.msra.mxu3 %v537_v50 }
  0x1b   :  { %546 = vmatpush.bf16.msra.mxu1 %v519_v16  ;;  %248 = vmatpush.bf16.msra.mxu2 %v528_v38 }
  0x1d   :  { %419 = vmatmul.msk.bf16.gmra.mxu0 %vm46_vm2, %v36_v15 }
  0x1e   :  { %156 = vmatpush.bf16.msrb.mxu0 %v520_v14  ;;  %338 = vmatpush.bf16.msra.mxu3 %v536_v61 }
  0x1f   :  { %547 = vmatpush.bf16.msra.mxu1 %v518_v17  ;;  %249 = vmatpush.bf16.msra.mxu2 %v527_v39 }
  0x22   :  { %157 = vmatpush.bf16.msrb.mxu0 %v519_v16  ;;  %339 = vmatpush.bf16.msra.mxu3 %v535_v62  ;;  %v556_v16 = vld [vmem:[%s647_s2 + $0x3] ss:$0 sm:$0xff] }
  0x23   :  { %548 = vmatpush.bf16.msra.mxu1 %v517_v18  ;;  %250 = vmatpush.bf16.msra.mxu2 %v526_v40 }
  0x26   :  { %158 = vmatpush.bf16.msrb.mxu0 %v518_v17  ;;  %340 = vmatpush.bf16.msra.mxu3 %v534_v63 }
  0x27   :  { %251 = vmatpush.bf16.msra.mxu2 %v525_v41 }
  0x2a   :  { %159 = vmatpush.bf16.msrb.mxu0 %v517_v18  ;;  %341 = vmatpush.bf16.msra.mxu3 %v533_v0 }
  0x8a   :  { %v69_v20 = vpop.f32.mrf.mxu0 }
  0x8b   :  { %v70_v24 = vadd.f32 %v553_v22, %v69_v20 }
  0x8d   :  { %v79_v28 = vmax.f32 %v70_v24, 0.0 }
  0x92   :  { %v71_v25 = vpop.f32.mrf.mxu0 }
  0x93   :  { %v72_v26 = vadd.f32 %v553_v22, %v71_v25 }
  0x95   :  { %v80_v29 = vmax.f32 %v72_v26, 0.0 }
  0x97   :  { %v83_v30 = vpack.c.bf16 %v80_v29, %v79_v28 }
  0x99   :  { %160 = vmatmul.bf16.vlgmr.msrb.gmra.mxu0 %v83_v30 }
  0x9a   :  { %v74_v31 = vpop.f32.mrf.mxu0 }
  0x9b   :  { %v75_v32 = vadd.f32 %v553_v22, %v74_v31 }
  0x9d   :  { %v81_v35 = vmax.f32 %v75_v32, 0.0 }
  0xa2   :  { %v76_v33 = vpop.f32.mrf.mxu0 }
  0xa3   :  { %v77_v34 = vadd.f32 %v553_v22, %v76_v33 }
  0xa5   :  { %v82_v36 = vmax.f32 %v77_v34, 0.0 }
  0xa7   :  { %v84_v37 = vpack.c.bf16 %v82_v36, %v81_v35 }
  0xa9   :  { %165 = vmatmul.bf16.vlgmr.msra.gmra.mxu1 %v84_v37 }
 0x116   :  { %v161_v43 = vpop.f32.mrf.mxu0 }
 0x117   :  { %v162_v47 = vadd.f32 %v554_v45, %v161_v43 }
 0x119   :  { %v171_v51 = vmax.f32 %v162_v47, 0.0 }
 0x11e   :  { %v163_v48 = vpop.f32.mrf.mxu0 }
 0x11f   :  { %v164_v49 = vadd.f32 %v554_v45, %v163_v48 }
 0x121   :  { %v172_v52 = vmax.f32 %v164_v49, 0.0 }
 0x123   :  { %v175_v53 = vpack.c.bf16 %v172_v52, %v171_v51 }
 0x125   :  { %252 = vmatmul.bf16.vlgmr.msra.gmra.mxu2 %v175_v53 }
 0x126   :  { %v166_v54 = vpop.f32.mrf.mxu1 }
 0x127   :  { %v167_v55 = vadd.f32 %v554_v45, %v166_v54 }
 0x129   :  { %v173_v58 = vmax.f32 %v167_v55, 0.0 }
 0x12e   :  { %v168_v56 = vpop.f32.mrf.mxu1 }
 0x12f   :  { %v169_v57 = vadd.f32 %v554_v45, %v168_v56 }
 0x131   :  { %v174_v59 = vmax.f32 %v169_v57, 0.0 }
 0x133   :  { %v176_v60 = vpack.c.bf16 %v174_v59, %v173_v58 }
 0x135   :  { %257 = vmatmul.bf16.gmra.mxu2 %v176_v60 }
 0x1a8   :  { %v253_v1 = vpop.f32.mrf.mxu2 }
 0x1a9   :  { %v254_v3 = vadd.f32 %v555_v2, %v253_v1 }
 0x1ab   :  { %v263_v6 = vmax.f32 %v254_v3, 0.0 }
 0x1b0   :  { %v255_v4 = vpop.f32.mrf.mxu2 }
 0x1b1   :  { %v256_v5 = vadd.f32 %v555_v2, %v255_v4 }
 0x1b3   :  { %v264_v7 = vmax.f32 %v256_v5, 0.0 }
 0x1b5   :  { %v267_v8 = vpack.c.bf16 %v264_v7, %v263_v6 }
 0x1b7   :  { %342 = vmatmul.bf16.vlgmr.msra.gmra.mxu3 %v267_v8 }
 0x1b8   :  { %v258_v9 = vpop.f32.mrf.mxu2 }
 0x1b9   :  { %v259_v10 = vadd.f32 %v555_v2, %v258_v9 }
 0x1bb   :  { %v265_v13 = vmax.f32 %v259_v10, 0.0 }
 0x1c0   :  { %v260_v11 = vpop.f32.mrf.mxu2 }
 0x1c1   :  { %v261_v12 = vadd.f32 %v555_v2, %v260_v11 }
 0x1c3   :  { %v266_v14 = vmax.f32 %v261_v12, 0.0 }
 0x1c5   :  { %v268_v15 = vpack.c.bf16 %v266_v14, %v265_v13 }
 0x1c7   :  { %347 = vmatmul.bf16.gmra.mxu3 %v268_v15 }
 0x23a   :  { %v343_v17 = vpop.f32.mrf.mxu3 }
 0x23b   :  { %v355_v18 = vadd.f32 %v556_v16, %v343_v17 }
 0x23d   :  { %360 = vst.msk [vmem:[#allocation4] sm:$0xff] %vm359_vm3, %v355_v18 }
 0x242   :  { %v345_v19 = vpop.f32.mrf.mxu3 }
 0x243   :  { %v356_v20 = vadd.f32 %v556_v16, %v345_v19 }
 0x244   :  { %v398_v21 = vld [vmem:[#allocation4] sm:$0xff] }
 0x245   :  { %399 = vst [vmem:[%s648_s3] sm:$0xff] %v398_v21 }
 0x246   :  { %361 = vst.msk [vmem:[#allocation4 + $0x8] sm:$0xff] %vm359_vm3, %v356_v20 }
 0x24a   :  { %v348_v22 = vpop.f32.mrf.mxu3 }
 0x24b   :  { %v357_v23 = vadd.f32 %v556_v16, %v348_v22 }
 0x24d   :  { %v400_v24 = vld [vmem:[#allocation4 + $0x8] sm:$0xff]  ;;  %362 = vst.msk [vmem:[#allocation4 + $0x10] sm:$0xff] %vm359_vm3, %v357_v23 }
 0x24e   :  { %401 = vst [vmem:[%s648_s3 + $0x8] sm:$0xff] %v400_v24 }
 0x252   :  { %v350_v25 = vpop.f32.mrf.mxu3 }
 0x254   :  { %v402_v26 = vld [vmem:[#allocation4 + $0x10] sm:$0xff] }
 0x255   :  { %403 = vst [vmem:[%s648_s3 + $0x10] sm:$0xff] %v402_v26 }
 0x256   :  { %409 = vsyncpa [#allocation3], 1 }

</bundles_post_ra>
